<compile_context>
chip_gen: v6e
topology: v6e:2x2x1
jax: 0.10.0
libtpu: 0.0.40
codegen_flags: <defaults>
</compile_context>

<pallas_src>
import jax
import jax.numpy as jnp
from jax.experimental import pallas as pl
from jax.experimental.pallas import tpu as pltpu

_LANE = 128
_SUBLANE = 8
_TARGET_TILE_BYTES = 8 << 20      # per-buffer budget for the batch-tiled rows (x + out)
_VMEM_LIMIT_CAP = 48 << 20        # v7x-safe scoped-VMEM ceiling
_VMEM_LIMIT_FLOOR = 16 << 20
_VPU_MAX_OUTPUT_DIM = 8           # small-N probes skip the MXU entirely


def _round_up(v: int, m: int) -> int:
    return (v + m - 1) // m * m


def _pick_batch_tile(batch, input_dim, output_dim, x_itemsize, out_itemsize) -> int:
    """VMEM-budget-derived batch tile (accounts for 128-lane padding of K and N)."""
    row_bytes = (_round_up(input_dim, _LANE) * x_itemsize
                 + _round_up(output_dim, _LANE) * out_itemsize)
    tb_budget = max(_LANE, (_TARGET_TILE_BYTES // row_bytes) // _LANE * _LANE)
    if batch < 2 * _LANE:
        return batch                         # tiny batch: single tile is fine
    # Guarantee >= 2 grid steps so both v7x TensorCores get work.
    tb_two_steps = _round_up(pl.cdiv(batch, 2), _LANE)
    return max(_LANE, min(tb_budget, tb_two_steps))


def _vmem_limit_bytes(tb, input_dim, output_dim, x_itemsize, out_itemsize, w_itemsize) -> int:
    """Explicit scoped-VMEM request: double-buffered padded tiles + margin, v7x-capped."""
    x_tile = _round_up(tb, _SUBLANE) * _round_up(input_dim, _LANE) * x_itemsize
    o_tile = _round_up(tb, _SUBLANE) * _round_up(output_dim, _LANE) * out_itemsize
    w_oi = _round_up(output_dim, _SUBLANE) * _round_up(input_dim, _LANE) * w_itemsize
    w_io = _round_up(input_dim, _SUBLANE) * _round_up(output_dim, _LANE) * w_itemsize
    total = 2 * (x_tile + o_tile) + 2 * max(w_oi, w_io) + (4 << 20)
    return min(_VMEM_LIMIT_CAP, max(total, _VMEM_LIMIT_FLOOR))


def _probe_vpu_kernel(x_ref, w_ref, b_ref, o_ref):
    """Small output_dim path (no MXU).

    x_ref: (TB, K) VMEM   w_ref: (N, K) VMEM (PyTorch [out, in] layout, N small)
    b_ref: (N,)    SMEM   o_ref: (TB, N) VMEM (plain masked store; output bytes
                                               are negligible vs the x stream)
    """
    x = x_ref[...].astype(jnp.float32)                       # (TB, K)
    w = w_ref[...].astype(jnp.float32)                       # (N, K)
    n = w_ref.shape[0]
    cols = [jnp.sum(x * w[j], axis=1, keepdims=True)         # VPU mul + XLU reduce
            + b_ref[j].astype(jnp.float32)                   # scalar bias from SMEM
            for j in range(n)]
    y = cols[0] if n == 1 else jnp.concatenate(cols, axis=1)
    o_ref[...] = y.astype(o_ref.dtype)


def _probe_mxu_kernel(x_ref, wt_ref, b_ref, o_ref):
    """General path: canonical (TB,K)@(K,N) MXU contraction on pre-transposed W."""
    acc = jnp.dot(x_ref[...], wt_ref[...], preferred_element_type=jnp.float32)
    o_ref[...] = (acc + b_ref[...].astype(jnp.float32)).astype(o_ref.dtype)


def error_predictor_forward(x: jax.Array, weight: jax.Array, bias: jax.Array) -> jax.Array:
    """Equivalent of nn.Linear(input_dim, output_dim)(x).

    Args:
      x:      [batch, input_dim]       (f32 or bf16; accumulation is always f32)
      weight: [output_dim, input_dim]  (PyTorch layout)
      bias:   [output_dim]
    Returns:
      [batch, output_dim] in x.dtype
    """
    batch, input_dim = x.shape
    output_dim, k = weight.shape
    assert k == input_dim, "weight/input dim mismatch"
    out_dtype = x.dtype

    x_isz = jnp.dtype(x.dtype).itemsize
    o_isz = jnp.dtype(out_dtype).itemsize
    w_isz = jnp.dtype(weight.dtype).itemsize

    tb = _pick_batch_tile(batch, input_dim, output_dim, x_isz, o_isz)
    grid = (pl.cdiv(batch, tb),)
    cparams = pltpu.CompilerParams(
        dimension_semantics=("parallel",),
        vmem_limit_bytes=_vmem_limit_bytes(tb, input_dim, output_dim, x_isz, o_isz, w_isz),
    )

    if output_dim <= _VPU_MAX_OUTPUT_DIM:
        return pl.pallas_call(
            _probe_vpu_kernel,
            out_shape=jax.ShapeDtypeStruct((batch, output_dim), out_dtype),
            grid=grid,
            in_specs=[
                pl.BlockSpec((tb, input_dim), lambda i: (i, 0)),
                pl.BlockSpec((output_dim, input_dim), lambda i: (0, 0)),
                pl.BlockSpec(memory_space=pltpu.MemorySpace.SMEM),   # bias scalars
            ],
            out_specs=pl.BlockSpec((tb, output_dim), lambda i: (i, 0)),
            compiler_params=cparams,
        )(x, weight, bias)

    # General output_dim: one-time wrapper transpose so the MXU sees native (K, N).
    wt = weight.T
    b2d = bias.reshape(1, output_dim)
    return pl.pallas_call(
        _probe_mxu_kernel,
        out_shape=jax.ShapeDtypeStruct((batch, output_dim), out_dtype),
        grid=grid,
        in_specs=[
            pl.BlockSpec((tb, input_dim), lambda i: (i, 0)),
            pl.BlockSpec((input_dim, output_dim), lambda i: (0, 0)),
            pl.BlockSpec((1, output_dim), lambda i: (0, 0)),
        ],
        out_specs=pl.BlockSpec((tb, output_dim), lambda i: (i, 0)),
        compiler_params=cparams,
    )(x, wt, b2d)


if __name__ == "__main__":
    # Small shapes consistent with the module: batch=8, input_dim=32, output_dim=1.
    batch, input_dim, output_dim = 8, 32, 1

    key = jax.random.PRNGKey(0)
    kx, kw, kb, kx2, kw2, kb2 = jax.random.split(key, 6)

    # Deterministic init mimicking nn.Linear default (uniform in [-1/sqrt(in), 1/sqrt(in)]).
    bound = 1.0 / jnp.sqrt(jnp.float32(input_dim))
    weight = jax.random.uniform(kw, (output_dim, input_dim), jnp.float32, -bound, bound)
    bias = jax.random.uniform(kb, (output_dim,), jnp.float32, -bound, bound)

    x = jax.random.normal(kx, (batch, input_dim), jnp.float32)
    y = error_predictor_forward(x, weight, bias)
    jax.block_until_ready(y)
    y_ref = x @ weight.T + bias
    assert y.shape == (batch, output_dim)
    assert jnp.allclose(y, y_ref, atol=1e-5, rtol=1e-5)

    # Gridded (multi-tile, both-TensorCore) batch path.
    x_big = jax.random.normal(kx2, (1024, input_dim), jnp.float32)
    y_big = error_predictor_forward(x_big, weight, bias)
    jax.block_until_ready(y_big)
    assert jnp.allclose(y_big, x_big @ weight.T + bias, atol=1e-5, rtol=1e-5)

    # bf16 feed (kernel upcasts and accumulates in f32).
    x_bf = x_big.astype(jnp.bfloat16)
    y_bf = error_predictor_forward(x_bf, weight, bias)
    jax.block_until_ready(y_bf)
    assert jnp.allclose(y_bf.astype(jnp.float32),
                        x_bf.astype(jnp.float32) @ weight.T + bias,
                        atol=5e-2, rtol=5e-2)

    # General (MXU) path with larger output_dim and pre-transposed weight.
    out_dim2 = 32
    weight2 = jax.random.uniform(kw2, (out_dim2, input_dim), jnp.float32, -bound, bound)
    bias2 = jax.random.uniform(kb2, (out_dim2,), jnp.float32, -bound, bound)
    y2 = error_predictor_forward(x_big, weight2, bias2)
    jax.block_until_ready(y2)
    assert jnp.allclose(y2, x_big @ weight2.T + bias2, atol=1e-4, rtol=1e-4)

    print("KERNEL_OK")
</pallas_src>

<mosaic_0001>
module attributes {stable_mosaic.version = 11 : i64} {
  func.func @_probe_vpu_kernel(%arg0: i32, %arg1: memref<8x32xf32, #tpu.memory_space<vmem>>, %arg2: memref<1x32xf32, #tpu.memory_space<vmem>>, %arg3: memref<1xf32, #tpu.memory_space<smem>>, %arg4: memref<8x1xf32, #tpu.memory_space<vmem>>) attributes {dimension_semantics = [#tpu.dimension_semantics<parallel>], iteration_bounds = array<i64: 1>, scalar_prefetch = 0 : i64, scratch_operands = 0 : i64, tpu.core_type = #tpu.core_type<tc>, window_params = [{transform_indices = @transform_0, window_bounds = array<i64: 8, 32>}, {pipeline_mode = #tpu.pipeline_mode<synchronous>, transform_indices = @transform_1, window_bounds = array<i64: 1, 32>}, {transform_indices = @transform_2, window_bounds = array<i64: 1>}, {transform_indices = @transform_3, window_bounds = array<i64: 8, 1>}]} {
    %c0 = arith.constant 0 : index
    %c0_0 = arith.constant 0 : index
    %0 = vector.load %arg1[%c0, %c0_0] : memref<8x32xf32, #tpu.memory_space<vmem>>, vector<8x32xf32>
    %c0_1 = arith.constant 0 : index
    %c0_2 = arith.constant 0 : index
    %1 = vector.load %arg2[%c0_1, %c0_2] : memref<1x32xf32, #tpu.memory_space<vmem>>, vector<1x32xf32>
    %2 = vector.shape_cast %1 : vector<1x32xf32> to vector<32xf32>
    %3 = vector.shape_cast %2 : vector<32xf32> to vector<1x32xf32>
    %4 = vector.broadcast %3 : vector<1x32xf32> to vector<8x32xf32>
    %5 = arith.mulf %0, %4 : vector<8x32xf32>
    %cst = arith.constant dense<0.000000e+00> : vector<8xf32>
    %6 = vector.multi_reduction <add>, %5, %cst [1] : vector<8x32xf32> to vector<8xf32>
    %7 = vector.shape_cast %6 : vector<8xf32> to vector<8x1xf32>
    %c0_3 = arith.constant 0 : index
    %8 = memref.load %arg3[%c0_3] : memref<1xf32, #tpu.memory_space<smem>>
    %9 = vector.broadcast %8 : f32 to vector<8x1xf32>
    %10 = arith.addf %7, %9 : vector<8x1xf32>
    %c0_4 = arith.constant 0 : index
    %c0_5 = arith.constant 0 : index
    %11 = vector.load %arg4[%c0_4, %c0_5] : memref<8x1xf32, #tpu.memory_space<vmem>>, vector<8x1xf32>
    tpu.vector_store %arg4[%c0_4, %c0_5], %10 {strides = array<i32>} : memref<8x1xf32, #tpu.memory_space<vmem>>, vector<8x1xf32>,
    return
  }
  func.func @transform_0(%arg0: i32) -> (i32, i32) {
    %c0_i32 = arith.constant 0 : i32
    %c0_i32_0 = arith.constant 0 : i32
    return %arg0, %c0_i32 : i32, i32
  }
  func.func @transform_1(%arg0: i32) -> (i32, i32) {
    %c0_i32 = arith.constant 0 : i32
    %c0_i32_0 = arith.constant 0 : i32
    %c0_i32_1 = arith.constant 0 : i32
    return %c0_i32, %c0_i32_0 : i32, i32
  }
  func.func @transform_2(%arg0: i32) -> i32 {
    %c0_i32 = arith.constant 0 : i32
    %c0_i32_0 = arith.constant 0 : i32
    return %c0_i32 : i32
  }
  func.func @transform_3(%arg0: i32) -> (i32, i32) {
    %c0_i32 = arith.constant 0 : i32
    %c0_i32_0 = arith.constant 0 : i32
    return %arg0, %c0_i32 : i32, i32
  }
}

</mosaic_0001>

<bundles_post_ra>
// kernel: tpu_custom_call.1
= control target key start
LH: loop header
LB: loop body
LE: loop exit
PB: predicated region body
PF: predicated region fallthrough
CT: control target
= control target key end

     0   :  { %9 = vsyncpa [#allocation4], 0  ;;  %s74_s12 = smov [#allocation3]   ;;  %s107_s0 = inlined_call_operand.hbm [shape: f32[8,32], index: 0, kind: input, shape index: {}]   ;;  %s108_s1 = inlined_call_operand.vmem [shape: f32[1,32], index: 1, kind: input, shape index: {}]   ;;  %s109_s2 = inlined_call_operand.<no memory space> [shape: f32[1], index: 2, kind: input, shape index: {}]   ;;  %s110_s3 = inlined_call_operand.vmem [shape: f32[8,1], index: 3, kind: output, shape index: {}]  }
   0x1   :  { %s16_s13 = sshll.u32 %s74_s12, 4  ;;  %s17_s13 = int_to_ptr.vmem [resolvable:$true] %s16_s13 }
   0x2   :  { %s60_s14 = scalar_lea.vmem %s17_s13, 128  ;;  %p65_p1 = scmp.lt.s32.totalorder %s17_s13, %s17_s13 }
   0x3   :  { %p61_p0 = scmp.ne.s32.totalorder %s17_s13, %s60_s14  ;;  %p66_p2 = scmp.lt.s32.totalorder %s60_s14, %s60_s14 }
   0x5   :  { %p67_p3 = por %p66_p2, %p65_p1 }
   0x7   :  { %p68_p4 = pnand %p67_p3, %p61_p0 }
   0x9   :  { %71 = shalt.err (!%p68_p4)
}
   0xa   :  { %19 = dma.hbm_to_vmem [thread:$0]  %s107_s0, 128, %s17_s13, [#allocation4]  }
   0xb   :  { %72 = dma.done.wait [#allocation4], 128  }
   0xc   :  { %73 = vsyncadd [#allocation4], 4294967168  ;;  %v27_v0 = vld [vmem:[#allocation3] sm:$0xff]  ;;  %vm36_vm0 = vcmask 261120   ;;  %v41_v4 = vstv %s109_s2  ;;  %vm43_vm1 = vcmask 7168  }
   0xd   :  { %v50_v1 = vld [vmem:[%s108_s1] ss:$0 sm:$0xff] }
   0xe   :  { %v35_v2 = vmul.f32 %v50_v1, %v27_v0 }
  0x10   :  { %v37_v3 = vsel %vm36_vm0, %v35_v2, 0.0 }
  0x11   :  { %38 = vadd.xlane.f32.xlu0 %v37_v3 }
  0x9a   :  { %v39_v5 = vpop.xlane.xlu0 %38 }
  0x9b   :  { %v42_v6 = vadd.f32 %v41_v4, %v39_v5 }
  0x9d   :  { %44 = vst.msk [vmem:[%s110_s3] sm:$0xff] %vm43_vm1, %v42_v6 }
  0x9e   :  { %49 = vsyncpa [#allocation4], 1 }

</bundles_post_ra>
